<compile_context>
chip_gen: v6e
topology: v6e:2x2x1
jax: 0.10.0
libtpu: 0.0.40
codegen_flags: <defaults>
</compile_context>

<pallas_src>
import functools

import jax
import jax.numpy as jnp
from jax.experimental import pallas as pl
from jax.experimental.pallas import tpu as pltpu


def _round_up(a: int, m: int) -> int:
    return ((a + m - 1) // m) * m


def _branch_node_kernel(x_ref, w_ref, b_ref, o_ref, *, scale, n_out):
    # x_ref: (tb, feat)      batch tile (f32 or bf16)
    # w_ref: (feat, n_pad)   pre-transposed, lane-padded weight (resident)
    # b_ref: (1, n_pad)      lane-padded bias (resident)
    # o_ref: (tb, n_out)     compact output tile (no pad columns hit HBM)
    y = jnp.dot(x_ref[...], w_ref[...], preferred_element_type=jnp.float32)
    y = y + b_ref[...]                           # broadcast bias over batch
    # sigmoid(-scale * y) == 1 / (1 + exp(scale * y)); exp rides the EUP slot.
    # exp overflow -> inf -> result 0.0 matches the sigmoid asymptote.
    z = 1.0 / (1.0 + jnp.exp(scale * y))
    o_ref[...] = z[:, :n_out].astype(o_ref.dtype)


def branch_node_net(x, weight, bias, scale, *, compute_dtype=None,
                    vmem_tile_budget_bytes=16 << 20):
    """Forward pass of branchNodeNet.

    Args:
      x:      (batch, featNum) float32
      weight: (branchNodeNum, featNum) float32 -- PyTorch Linear layout
      bias:   (branchNodeNum,) float32
      scale:  python float
      compute_dtype: optional narrower dtype (e.g. jnp.bfloat16) for the matmul
        inputs; accumulation and epilogue stay float32.
    Returns:
      (batch, branchNodeNum) float32
    """
    batch, feat = x.shape
    n_nodes = weight.shape[0]
    assert weight.shape[1] == feat and bias.shape == (n_nodes,)

    # --- parameter prep (one-time, fuses with pad): transpose to (feat, n_pad).
    n_pad = _round_up(n_nodes, 128)
    w_t = jnp.pad(weight, ((0, n_pad - n_nodes), (0, 0))).T          # (feat, n_pad)
    b_p = jnp.pad(bias, (0, n_pad - n_nodes)).reshape(1, n_pad)      # (1, n_pad)

    if compute_dtype is not None:
        x = x.astype(compute_dtype)
        w_t = w_t.astype(compute_dtype)

    # --- batch tile derived from a VMEM budget (double-buffered x + out rows,
    # both lane-padded to 128 in VMEM), capped and rounded to a multiple of 8.
    elem_bytes = jnp.dtype(x.dtype).itemsize
    feat_pad = _round_up(feat, 128)
    per_row_bytes = 2 * (elem_bytes * feat_pad + 4 * n_pad)   # 2x = double buffer
    tb_cap = max(8, (vmem_tile_budget_bytes // per_row_bytes) // 8 * 8)
    tb_cap = min(tb_cap, 8192)

    tb = min(batch, tb_cap)
    if tb == batch and batch >= 16:
        # Split into >= 2 grid steps so the "parallel" axis can use both v7x TCs.
        half = _round_up(pl.cdiv(batch, 2), 8)
        if half < batch:
            tb = half
    if tb != batch:
        tb = max(8, (tb // 8) * 8)

    grid = (pl.cdiv(batch, tb),)

    # --- explicit scoped-VMEM limit: above the 16/32 MiB defaults, below v7x's
    # 64 MiB physical VMEM.
    vmem_need = (2 * tb * (elem_bytes * feat_pad + 4 * n_pad)
                 + _round_up(feat, 8) * n_pad * elem_bytes + 8 * n_pad * 4)
    vmem_limit = int(min(max(vmem_need + (8 << 20), 32 << 20), 56 << 20))

    kernel = functools.partial(_branch_node_kernel, scale=float(scale),
                               n_out=n_nodes)

    cost = pl.CostEstimate(
        flops=2 * batch * feat * n_pad,
        transcendentals=batch * n_pad,
        bytes_accessed=(elem_bytes * batch * feat + elem_bytes * feat * n_pad
                        + 4 * n_pad + 4 * batch * n_nodes),
    )

    out = pl.pallas_call(
        kernel,
        out_shape=jax.ShapeDtypeStruct((batch, n_nodes), jnp.float32),
        grid=grid,
        in_specs=[
            pl.BlockSpec((tb, feat), lambda i: (i, 0)),       # x: tiled over batch
            pl.BlockSpec((feat, n_pad), lambda i: (0, 0)),    # weight: resident
            pl.BlockSpec((1, n_pad), lambda i: (0, 0)),       # bias: resident
        ],
        out_specs=pl.BlockSpec((tb, n_nodes), lambda i: (i, 0)),  # compact output
        compiler_params=pltpu.CompilerParams(
            dimension_semantics=("parallel",),                # megacore shard on v7x
            vmem_limit_bytes=vmem_limit,
        ),
        cost_estimate=cost,
    )(x, w_t, b_p)

    return out


def _torch_linear_init(key, out_features, in_features):
    """Deterministic init matching torch.nn.Linear default (uniform +-1/sqrt(in))."""
    kw, kb = jax.random.split(key)
    bound = 1.0 / jnp.sqrt(jnp.float32(in_features))
    weight = jax.random.uniform(kw, (out_features, in_features),
                                minval=-bound, maxval=bound, dtype=jnp.float32)
    bias = jax.random.uniform(kb, (out_features,),
                              minval=-bound, maxval=bound, dtype=jnp.float32)
    return weight, bias


if __name__ == "__main__":
    tree_depth = 3
    feat_num = 32                            # p
    branch_node_num = 2 ** tree_depth - 1    # 7
    scale = 2.0
    batch = 8

    key = jax.random.PRNGKey(0)
    k_x, k_p = jax.random.split(key)
    x = jax.random.normal(k_x, (batch, feat_num), dtype=jnp.float32)
    weight, bias = _torch_linear_init(k_p, branch_node_num, feat_num)

    out = branch_node_net(x, weight, bias, scale)
    out = jax.block_until_ready(out)

    # Reference check (plain JAX) for semantics parity with the PyTorch module.
    ref = jax.nn.sigmoid(-scale * (x @ weight.T + bias))
    assert out.shape == (batch, branch_node_num)
    assert jnp.allclose(out, ref, atol=1e-5, rtol=1e-5)

    print("KERNEL_OK")
</pallas_src>

<mosaic_0001>
module attributes {stable_mosaic.version = 11 : i64} {
  func.func @_branch_node_kernel(%arg0: i32, %arg1: memref<8x32xf32, #tpu.memory_space<vmem>>, %arg2: memref<32x128xf32, #tpu.memory_space<vmem>>, %arg3: memref<1x128xf32, #tpu.memory_space<vmem>>, %arg4: memref<8x7xf32, #tpu.memory_space<vmem>>) attributes {dimension_semantics = [#tpu.dimension_semantics<parallel>], iteration_bounds = array<i64: 1>, scalar_prefetch = 0 : i64, scratch_operands = 0 : i64, tpu.core_type = #tpu.core_type<tc>, window_params = [{transform_indices = @transform_0, window_bounds = array<i64: 8, 32>}, {pipeline_mode = #tpu.pipeline_mode<synchronous>, transform_indices = @transform_1, window_bounds = array<i64: 32, 128>}, {pipeline_mode = #tpu.pipeline_mode<synchronous>, transform_indices = @transform_2, window_bounds = array<i64: 1, 128>}, {transform_indices = @transform_3, window_bounds = array<i64: 8, 7>}]} {
    %c0 = arith.constant 0 : index
    %c0_0 = arith.constant 0 : index
    %0 = vector.load %arg1[%c0, %c0_0] : memref<8x32xf32, #tpu.memory_space<vmem>>, vector<8x32xf32>
    %c0_1 = arith.constant 0 : index
    %c0_2 = arith.constant 0 : index
    %1 = vector.load %arg2[%c0_1, %c0_2] : memref<32x128xf32, #tpu.memory_space<vmem>>, vector<32x128xf32>
    %cst = arith.constant dense<0.000000e+00> : vector<8x128xf32>
    %2 = tpu.matmul %0, %1, %cst {dimension_numbers = #tpu.dot_dimension_numbers<[1], [0], [0], [1], [0, 0, 1, 1], [], []>} : vector<8x32xf32>, vector<32x128xf32>, vector<8x128xf32> -> vector<8x128xf32>
    %c0_3 = arith.constant 0 : index
    %c0_4 = arith.constant 0 : index
    %3 = vector.load %arg3[%c0_3, %c0_4] : memref<1x128xf32, #tpu.memory_space<vmem>>, vector<1x128xf32>
    %4 = vector.broadcast %3 : vector<1x128xf32> to vector<8x128xf32>
    %5 = arith.addf %2, %4 : vector<8x128xf32>
    %cst_5 = arith.constant 2.000000e+00 : f32
    %6 = vector.broadcast %cst_5 : f32 to vector<8x128xf32>
    %7 = arith.mulf %6, %5 : vector<8x128xf32>
    %8 = math.exp %7 : vector<8x128xf32>
    %cst_6 = arith.constant 1.000000e+00 : f32
    %9 = vector.broadcast %cst_6 : f32 to vector<8x128xf32>
    %10 = arith.addf %9, %8 : vector<8x128xf32>
    %cst_7 = arith.constant 1.000000e+00 : f32
    %11 = vector.broadcast %cst_7 : f32 to vector<8x128xf32>
    %12 = arith.divf %11, %10 : vector<8x128xf32>
    %13 = vector.extract_strided_slice %12 {offsets = [0, 0], sizes = [8, 7], strides = [1, 1]} : vector<8x128xf32> to vector<8x7xf32>
    %c0_8 = arith.constant 0 : index
    %c0_9 = arith.constant 0 : index
    %14 = vector.load %arg4[%c0_8, %c0_9] : memref<8x7xf32, #tpu.memory_space<vmem>>, vector<8x7xf32>
    tpu.vector_store %arg4[%c0_8, %c0_9], %13 {strides = array<i32>} : memref<8x7xf32, #tpu.memory_space<vmem>>, vector<8x7xf32>,
    return
  }
  func.func @transform_0(%arg0: i32) -> (i32, i32) {
    %c0_i32 = arith.constant 0 : i32
    %c0_i32_0 = arith.constant 0 : i32
    return %arg0, %c0_i32 : i32, i32
  }
  func.func @transform_1(%arg0: i32) -> (i32, i32) {
    %c0_i32 = arith.constant 0 : i32
    %c0_i32_0 = arith.constant 0 : i32
    %c0_i32_1 = arith.constant 0 : i32
    return %c0_i32, %c0_i32_0 : i32, i32
  }
  func.func @transform_2(%arg0: i32) -> (i32, i32) {
    %c0_i32 = arith.constant 0 : i32
    %c0_i32_0 = arith.constant 0 : i32
    %c0_i32_1 = arith.constant 0 : i32
    return %c0_i32, %c0_i32_0 : i32, i32
  }
  func.func @transform_3(%arg0: i32) -> (i32, i32) {
    %c0_i32 = arith.constant 0 : i32
    %c0_i32_0 = arith.constant 0 : i32
    return %arg0, %c0_i32 : i32, i32
  }
}

</mosaic_0001>

<bundles_post_ra>
// kernel: tpu_custom_call.1
= control target key start
LH: loop header
LB: loop body
LE: loop exit
PB: predicated region body
PF: predicated region fallthrough
CT: control target
= control target key end

     0   :  { %8 = vsyncpa [#allocation3], 0  ;;  %s285_s0 = inlined_call_operand.hbm [shape: f32[8,32], index: 0, kind: input, shape index: {}]   ;;  %s286_s1 = inlined_call_operand.hbm [shape: f32[32,128], index: 1, kind: input, shape index: {}]   ;;  %s287_s2 = inlined_call_operand.vmem [shape: f32[1,128], index: 2, kind: input, shape index: {}]   ;;  %s288_s3 = inlined_call_operand.hbm [shape: f32[8,7], index: 3, kind: output, shape index: {}]  }
   0x1   :  { %9 = vsyncpa [#allocation6], 0 }
   0x2   :  { %10 = vsyncpa [#allocation4], 0  ;;  %s246_s12 = smov [#allocation2]   ;;  %s247_s14 = smov [#allocation5]  }
   0x3   :  { %s17_s13 = sshll.u32 %s246_s12, 4  ;;  %s26_s15 = sshll.u32 %s247_s14, 4  ;;  %s18_s13 = int_to_ptr.vmem [resolvable:$true] %s17_s13  ;;  %s27_s15 = int_to_ptr.vmem [resolvable:$true] %s26_s15 }
   0x4   :  { %s188_s16 = scalar_lea.vmem %s18_s13, 128  ;;  %p193_p1 = scmp.lt.s32.totalorder %s18_s13, %s18_s13 }
   0x5   :  { %p189_p0 = scmp.ne.s32.totalorder %s18_s13, %s188_s16  ;;  %p194_p2 = scmp.lt.s32.totalorder %s188_s16, %s188_s16 }
   0x7   :  { %p195_p3 = por %p194_p2, %p193_p1 }
   0x9   :  { %p196_p4 = pnand %p195_p3, %p189_p0 }
   0xb   :  { %199 = shalt.err (!%p196_p4)
}
   0xc   :  { %20 = dma.hbm_to_vmem [thread:$0]  %s285_s0, 128, %s18_s13, [#allocation3]  }
   0xd   :  { %s208_s19 = scalar_lea.vmem %s27_s15, 512  ;;  %p213_p6 = scmp.lt.s32.totalorder %s27_s15, %s27_s15 }
   0xe   :  { %p209_p5 = scmp.ne.s32.totalorder %s27_s15, %s208_s19  ;;  %p214_p7 = scmp.lt.s32.totalorder %s208_s19, %s208_s19 }
  0x10   :  { %p215_p8 = por %p214_p7, %p213_p6 }
  0x12   :  { %p216_p9 = pnand %p215_p8, %p209_p5 }
  0x14   :  { %219 = shalt.err (!%p216_p9)
}
  0x15   :  { %s248_s20 = smov 128   ;;  %s249_s21 = smov 8  }
  0x16   :  { %32 = dma.hbm_to_vmem [thread:$0]  %s286_s1, 512, %s27_s15, [#allocation6], %s248_s20, %s248_s20, %s249_s21  }
  0x17   :  { %240 = dma.done.wait [#allocation3], 128  }
  0x18   :  { %241 = vsyncadd [#allocation3], 4294967168 }
  0x19   :  { %242 = dma.done.wait [#allocation6], 512  }
  0x1a   :  { %243 = vsyncadd [#allocation6], 4294966784  ;;  %v250_v0 = vmov 0.0   ;;  %vm251_vm0 = vmmov 0   ;;  %v45_v1 = vld [vmem:[#allocation5 + $0x18] sm:$0xff]  ;;  %v44_v2 = vld [vmem:[#allocation5 + $0x10] sm:$0xff] }
  0x1b   :  { %158 = vmatprep.subr.mxu0 %v250_v0  ;;  %166 = vmatprep.mubr.msk.f32.mxu0 %vm251_vm0, %v250_v0  ;;  %v43_v3 = vld [vmem:[#allocation5 + $0x8] sm:$0xff]  ;;  %v42_v4 = vld [vmem:[#allocation5] sm:$0xff]  ;;  %v41_v5 = vld [vmem:[#allocation2] sm:$0xff]  ;;  %vm53_vm1 = vcmask 261120   ;;  %s252_s24 = smov [#allocation7]   ;;  %vm133_vm2 = vcmask 56320  }
  0x1c   :  { %159 = vmatpush3.msra.mxu0 %v45_v1  ;;  %v151_v6 = vld [vmem:[%s287_s2] ss:$0 sm:$0xff]  ;;  %s141_s25 = sshll.u32 %s252_s24, 4  ;;  %s142_s25 = int_to_ptr.vmem [resolvable:$true] %s141_s25 }
  0x1d   :  { %160 = vmatprep.subr.mxu0 %v250_v0  ;;  %s220_s26 = scalar_lea.vmem %s142_s25, 128  ;;  %p225_p11 = scmp.lt.s32.totalorder %s142_s25, %s142_s25 }
  0x1e   :  { %161 = vmatpush3.msra.mxu0 %v44_v2  ;;  %p221_p10 = scmp.ne.s32.totalorder %s142_s25, %s220_s26  ;;  %p226_p12 = scmp.lt.s32.totalorder %s220_s26, %s220_s26 }
  0x1f   :  { %162 = vmatprep.subr.mxu0 %v250_v0 }
  0x20   :  { %163 = vmatpush3.msra.mxu0 %v43_v3  ;;  %p227_p13 = por %p226_p12, %p225_p11 }
  0x21   :  { %164 = vmatprep.subr.mxu0 %v250_v0 }
  0x22   :  { %165 = vmatpush3.msra.mxu0 %v42_v4  ;;  %p228_p0 = pnand %p227_p13, %p221_p10 }
  0x23   :  { %167 = vmatmul.mubr.msk.f32.vlgmr.msra.gmra.mxu0 %vm53_vm1, %v41_v5 }
  0xe3   :  { %v123_v7 = vpop.f32.mrf.mxu0 }
  0xe4   :  { %v124_v8 = vadd.f32 %v151_v6, %v123_v7 }
  0xe5   :  { %v168_v9 = vpop.f32.mrf.mxu0 }
  0xe6   :  { %v127_v10 = vmul.f32 2.0, %v124_v8 }
  0xe8   :  { %v128_v11 = vmul.f32 1.442695, %v127_v10 }
  0xea   :  { %176 = vpow2.f32 %v128_v11 }
  0xf7   :  { %v177_v12 = vpop.eup %176 }
  0xf8   :  { %v130_v13 = vadd.f32 1.0, %v177_v12 }
  0xfa   :  { %178 = vrcp.f32 %v130_v13 }
 0x107   :  { %v179_v14 = vpop.eup %178 }
 0x108   :  { %134 = vst.msk [vmem:[#allocation7] sm:$0xff] %vm133_vm2, %v179_v14 }
 0x109   :  { %231 = shalt.err (!%p228_p0)
}
 0x10a   :  { %144 = dma.vmem_to_hbm [thread:$0]  %s142_s25, 128, %s288_s3, [#allocation4]  }
 0x10b   :  { %244 = dma.done.wait [#allocation4], 128  }
 0x10c   :  { %245 = vsyncadd [#allocation4], 4294967168 }
 0x10d   :  { %148 = vsyncpa [#allocation3], 1 }
 0x10e   :  { %149 = vsyncpa [#allocation6], 1 }
 0x10f   :  { %150 = vsyncpa [#allocation4], 1 }

</bundles_post_ra>
